<compile_context>
chip_gen: v6e
topology: v6e:2x2x1
jax: 0.10.0
libtpu: 0.0.40
codegen_flags: <defaults>
</compile_context>

<pallas_src>
import jax
import jax.numpy as jnp
from jax.experimental import pallas as pl
from jax.experimental.pallas import tpu as pltpu

NB_CLASSES = 3                      # stand-in for config.NB_CLASSES (external config)
FPN_CHANNELS = 64                   # efficientdet-d0 fpn_channels (model_outputs)
STEM_PATCH = 4                      # FPN level-0 (min_level=2) -> stride-4 feature map
K_PATCH = STEM_PATCH * STEM_PATCH   # 16 (in_chans = 1)
N_OUT = NB_CLASSES + 2 + 2 + 1 + 2  # cls + size + offset + distance + tracking = 10


# ---------------------------------------------------------------------------
# Fused kernel: single (N_OUT x K_PATCH) matmul + bias per pixel tile.
#   x_ref : (16,  tm)  bf16   flattened 4x4 patches, channel-major (pixels on lanes)
#   w_ref : (10,  16)  bf16   W_heads @ W_stem   (stem folded into the heads)
#   b_ref : (10,   1)  f32    W_heads @ b_stem + b_heads
#   o_ref : (10,  tm)  f32    all head outputs, channel-major (already NCHW)
# ---------------------------------------------------------------------------
def _fused_conv1x1_kernel(x_ref, w_ref, b_ref, o_ref):
    o_ref[...] = jnp.dot(w_ref[...], x_ref[...],
                         preferred_element_type=jnp.float32) + b_ref[...]


def _round_up(x, m):
    return ((x + m - 1) // m) * m


def _pick_tile(m_pix, batch, tm_max=8192, min_grid=4):
    """128-aligned pixel-tile width.

    Big tiles amortize per-grid-step overhead and lengthen DMAs, but we keep
    B * n_tiles >= min_grid so the ("parallel","parallel") grid can shard
    across v7x's two TensorCores (irrelevant but harmless on v5e/v6e)."""
    if m_pix <= 128:
        return m_pix                              # single full-extent block
    want_tiles = -(-min_grid // batch)            # ceil(min_grid / batch)
    tm = _round_up(-(-m_pix // want_tiles), 128)  # ceil(m_pix / want_tiles), 128-aligned
    return min(tm, tm_max, _round_up(m_pix, 128))


def fused_conv1x1(patches_t, w_fused, b_fused, *, tm_max=8192):
    """patches_t: (B, 16, Mpix) bf16 -> (B, N_OUT, Mpix) f32, channel-major."""
    B, k_patch, m_pix = patches_t.shape
    n_out = w_fused.shape[0]
    tm = _pick_tile(m_pix, B, tm_max=tm_max)

    # VMEM budget derived from actual tile bytes (double-buffered in/out tiles
    # + resident weights), with generous headroom; stays well under v7x's 64 MiB.
    io_bytes = 2 * (k_patch * tm * 2 + n_out * tm * 4) + n_out * (k_patch * 2 + 4)
    vmem_limit = int(min(max(4 * io_bytes, 16 * 1024 * 1024), 48 * 1024 * 1024))

    return pl.pallas_call(
        _fused_conv1x1_kernel,
        out_shape=jax.ShapeDtypeStruct((B, n_out, m_pix), jnp.float32),
        grid=(B, pl.cdiv(m_pix, tm)),
        in_specs=[
            pl.BlockSpec((None, k_patch, tm), lambda b, i: (b, 0, i)),  # patches tile
            pl.BlockSpec((n_out, k_patch), lambda b, i: (0, 0)),        # fused W (resident)
            pl.BlockSpec((n_out, 1), lambda b, i: (0, 0)),               # fused b (resident)
        ],
        out_specs=pl.BlockSpec((None, n_out, tm), lambda b, i: (b, 0, i)),
        compiler_params=pltpu.CompilerParams(
            dimension_semantics=("parallel", "parallel"),
            vmem_limit_bytes=vmem_limit,
        ),
    )(patches_t, w_fused, b_fused)


# ---------------------------------------------------------------------------
# Deterministic parameter initialization (shapes follow the module __init__).
# ---------------------------------------------------------------------------
def init_params(key):
    ks = jax.random.split(key, 12)
    p = {}
    p["stem_w"] = jax.random.normal(ks[0], (K_PATCH, FPN_CHANNELS), jnp.float32) * 0.05
    p["stem_b"] = jax.random.normal(ks[1], (FPN_CHANNELS,), jnp.float32) * 0.01
    heads = dict(cls=NB_CLASSES, size=2, offset=2, distance=1, tracking=2)
    for i, (name, c) in enumerate(heads.items()):
        p[f"{name}_w"] = jax.random.normal(ks[2 + 2 * i], (FPN_CHANNELS, c), jnp.float32) * 0.05
        p[f"{name}_b"] = jax.random.normal(ks[3 + 2 * i], (c,), jnp.float32) * 0.01
    return p


# ---------------------------------------------------------------------------
# Forward pass mirroring EffDetTsmSegmentation.forward
# ---------------------------------------------------------------------------
def effdet_tsm_segmentation_forward(params, inputs, *, tm_max=8192):
    # inputs: (B, T, H, W) -- same as the torch module
    B, T, H, W = inputs.shape
    assert T >= 2, "module takes x[:, 1]; needs T >= 2"
    P = STEM_PATCH
    Hp, Wp = H // P, W // P
    m_pix = Hp * Wp

    # Only the t=1 frame reaches the heads: slice BEFORE any compute so the
    # other T-1 frames are never read.
    x1 = inputs[:, 1]                                            # (B, H, W)

    # TODO(synk): the EfficientDet backbone + BiFPN (and the tsm() channel-shift
    # hooks on resnet conv1 layers) have no self-contained Pallas equivalent;
    # they are replaced by a deterministic stride-4 patch-embedding stub.  The
    # slice + space-to-depth + bf16 cast below stay one fused XLA copy (the 4x4
    # lane-granular deinterleave is the only wrapper-side HBM round trip left).
    patches_t = (
        x1.reshape(B, Hp, P, Wp, P)
          .transpose(0, 2, 4, 1, 3)                              # (B, P, P, Hp, Wp)
          .reshape(B, P * P, m_pix)
          .astype(jnp.bfloat16)                                  # (B, 16, Mpix)
    )

    # All five 1x1-conv heads concatenated; 0.1 cls scale folded into cls weights.
    w_all = jnp.concatenate(
        [params["cls_w"] * 0.1, params["size_w"], params["offset_w"],
         params["distance_w"], params["tracking_w"]], axis=1)    # (64, 10) f32
    b_all = jnp.concatenate(
        [params["cls_b"], params["size_b"], params["offset_b"],
         params["distance_b"], params["tracking_b"]], axis=0)    # (10,)  f32

    # Algebraic stem+head fusion (exact: no nonlinearity between them).
    #   out = Wh @ (Ws @ patch + bs) + bh = (Wh @ Ws) @ patch + (Wh @ bs + bh)
    w_fused = (w_all.T @ params["stem_w"].T).astype(jnp.bfloat16)          # (10, 16)
    b_fused = (w_all.T @ params["stem_b"] + b_all).reshape(N_OUT, 1)       # (10, 1) f32

    out = fused_conv1x1(patches_t, w_fused, b_fused, tm_max=tm_max)        # (B, 10, Mpix) f32
    out = out.reshape(B, N_OUT, Hp, Wp)                                    # already NCHW

    c0 = NB_CLASSES
    return dict(
        cls=out[:, 0:c0],
        size=out[:, c0:c0 + 2],
        offset=out[:, c0 + 2:c0 + 4],
        distance=out[:, c0 + 4:c0 + 5],
        tracking=out[:, c0 + 5:c0 + 7],
    )


if __name__ == "__main__":
    key = jax.random.PRNGKey(0)
    pkey, ikey = jax.random.split(key)
    params = init_params(pkey)

    B, T, H, W = 2, 2, 16, 16
    inputs = jax.random.normal(ikey, (B, T, H, W), jnp.float32)

    res = effdet_tsm_segmentation_forward(params, inputs)
    res = jax.block_until_ready(res)

    Hp, Wp = H // STEM_PATCH, W // STEM_PATCH
    assert res["cls"].shape == (B, NB_CLASSES, Hp, Wp)
    assert res["size"].shape == (B, 2, Hp, Wp)
    assert res["offset"].shape == (B, 2, Hp, Wp)
    assert res["distance"].shape == (B, 1, Hp, Wp)
    assert res["tracking"].shape == (B, 2, Hp, Wp)
    assert all(v.dtype == jnp.float32 for v in res.values())
    assert all(bool(jnp.isfinite(v).all()) for v in res.values())
    print("KERNEL_OK")
</pallas_src>

<mosaic_0001>
module attributes {stable_mosaic.version = 11 : i64} {
  func.func @_fused_conv1x1_kernel(%arg0: i32, %arg1: i32, %arg2: memref<1x16x16xbf16, #tpu.memory_space<vmem>>, %arg3: memref<10x16xbf16, #tpu.memory_space<vmem>>, %arg4: memref<10x1xf32, #tpu.memory_space<vmem>>, %arg5: memref<1x10x16xf32, #tpu.memory_space<vmem>>) attributes {dimension_semantics = [#tpu.dimension_semantics<parallel>, #tpu.dimension_semantics<parallel>], iteration_bounds = array<i64: 2, 1>, scalar_prefetch = 0 : i64, scratch_operands = 0 : i64, tpu.core_type = #tpu.core_type<tc>, window_params = [{transform_indices = @transform_0, window_bounds = array<i64: 1, 16, 16>}, {pipeline_mode = #tpu.pipeline_mode<synchronous>, transform_indices = @transform_1, window_bounds = array<i64: 10, 16>}, {pipeline_mode = #tpu.pipeline_mode<synchronous>, transform_indices = @transform_2, window_bounds = array<i64: 10, 1>}, {transform_indices = @transform_3, window_bounds = array<i64: 1, 10, 16>}]} {
    %c0 = arith.constant 0 : index
    %c0_0 = arith.constant 0 : index
    %0 = vector.load %arg3[%c0, %c0_0] : memref<10x16xbf16, #tpu.memory_space<vmem>>, vector<10x16xbf16>
    %c0_1 = arith.constant 0 : index
    %c0_2 = arith.constant 0 : index
    %c0_3 = arith.constant 0 : index
    %1 = vector.load %arg2[%c0_1, %c0_2, %c0_3] : memref<1x16x16xbf16, #tpu.memory_space<vmem>>, vector<1x16x16xbf16>
    %2 = vector.shape_cast %1 : vector<1x16x16xbf16> to vector<16x16xbf16>
    %cst = arith.constant dense<0.000000e+00> : vector<10x16xf32>
    %3 = tpu.matmul %0, %2, %cst {dimension_numbers = #tpu.dot_dimension_numbers<[1], [0], [0], [1], [0, 0, 1, 1], [], []>} : vector<10x16xbf16>, vector<16x16xbf16>, vector<10x16xf32> -> vector<10x16xf32>
    %c0_4 = arith.constant 0 : index
    %c0_5 = arith.constant 0 : index
    %4 = vector.load %arg4[%c0_4, %c0_5] : memref<10x1xf32, #tpu.memory_space<vmem>>, vector<10x1xf32>
    %5 = vector.broadcast %4 : vector<10x1xf32> to vector<10x16xf32>
    %6 = arith.addf %3, %5 : vector<10x16xf32>
    %c0_6 = arith.constant 0 : index
    %c0_7 = arith.constant 0 : index
    %c0_8 = arith.constant 0 : index
    %7 = vector.load %arg5[%c0_6, %c0_7, %c0_8] : memref<1x10x16xf32, #tpu.memory_space<vmem>>, vector<1x10x16xf32>
    %8 = vector.shape_cast %7 : vector<1x10x16xf32> to vector<10x16xf32>
    %9 = vector.shape_cast %6 : vector<10x16xf32> to vector<1x10x16xf32>
    tpu.vector_store %arg5[%c0_6, %c0_7, %c0_8], %9 {strides = array<i32>} : memref<1x10x16xf32, #tpu.memory_space<vmem>>, vector<1x10x16xf32>,
    return
  }
  func.func @transform_0(%arg0: i32, %arg1: i32) -> (i32, i32, i32) {
    %c0_i32 = arith.constant 0 : i32
    %c0_i32_0 = arith.constant 0 : i32
    return %arg0, %c0_i32, %arg1 : i32, i32, i32
  }
  func.func @transform_1(%arg0: i32, %arg1: i32) -> (i32, i32) {
    %c0_i32 = arith.constant 0 : i32
    %c0_i32_0 = arith.constant 0 : i32
    %c0_i32_1 = arith.constant 0 : i32
    return %c0_i32, %c0_i32_0 : i32, i32
  }
  func.func @transform_2(%arg0: i32, %arg1: i32) -> (i32, i32) {
    %c0_i32 = arith.constant 0 : i32
    %c0_i32_0 = arith.constant 0 : i32
    %c0_i32_1 = arith.constant 0 : i32
    return %c0_i32, %c0_i32_0 : i32, i32
  }
  func.func @transform_3(%arg0: i32, %arg1: i32) -> (i32, i32, i32) {
    %c0_i32 = arith.constant 0 : i32
    %c0_i32_0 = arith.constant 0 : i32
    return %arg0, %c0_i32, %arg1 : i32, i32, i32
  }
}

</mosaic_0001>

<bundles_post_ra>
// kernel: tpu_custom_call.1
= control target key start
LH: loop header
LB: loop body
LE: loop exit
PB: predicated region body
PF: predicated region fallthrough
CT: control target
= control target key end

     0   :  { %8 = vsyncpa [#allocation3], 0  ;;  %s538_s12 = smov 0   ;;  %s540_s13 = smov 0   ;;  %s603_s0 = inlined_call_operand.vmem [shape: bf16[2,16,16], index: 0, kind: input, shape index: {}]   ;;  %s604_s1 = inlined_call_operand.hbm [shape: bf16[10,16], index: 1, kind: input, shape index: {}]   ;;  %s605_s2 = inlined_call_operand.vmem [shape: f32[10,1], index: 2, kind: input, shape index: {}]   ;;  %s606_s3 = inlined_call_operand.vmem [shape: f32[2,10,16], index: 3, kind: output, shape index: {}]  }
   0x1   :  { %s542_s14 = smov 0  }
   0x2 LB: > { %s389_s15 = sadd.s32 4294967295, %s510_s14   ;;  %s26_s16 = sadd.s32 1, %s506_s13  ;;  %s510_s14 = sphi %s542_s14, %s14_s14   ;;  %s506_s13 = sphi %s540_s13, %s610_s13   ;;  %s502_s12 = sphi %s538_s12, %s609_s12  }
   0x3   : > { %p28_p0 = scmp.ge.s32.totalorder %s26_s16, 2  ;;  %p391_p1 = scmp.ge.s32.totalorder %s510_s14, 1 }
   0x4   : > { %p129_p2 = scmp.lt.s32.totalorder %s510_s14, 3  ;;  %p563_p4 = scmp.eq.s32.totalorder %s389_s15, 0 }
   0x5   : > { %s612_s16 = smov (%p28_p0, %s26_s16), 0  ;;  %s512_s19 = smov [#allocation2]  }
   0x6   : > { %p559_p3 = pnand %p391_p1, %p129_p2  ;;  %s141_s20 = sshll.u32 %s512_s19, 4  ;;  %s142_s20 = int_to_ptr.vmem [resolvable:$true] %s141_s20 }
   0x7   : > { %s469_s21 = scalar_lea.vmem %s142_s20, 128  ;;  %p477_p11 = scmp.lt.s32.totalorder %s142_s20, %s142_s20 }
   0x8   : > { %p419_p5 = pneg %p559_p3  ;;  %p470_p8 = scmp.ne.s32.totalorder %s142_s20, %s469_s21 }
   0x9   : > { %p478_p12 = scmp.lt.s32.totalorder %s469_s21, %s469_s21 }
   0xa   : > { %p420_p6 = pnand %p563_p4, %p419_p5 }
   0xb   : > { %p479_p13 = por %p478_p12, %p477_p11 }
   0xc   : > { %p460_p7 = pneg %p420_p6 }
   0xe   : > { %p472_p9 = pnand %p470_p8, %p460_p7 }
  0x10   : > { %p473_p10 = pneg %p472_p9 }
  0x12   : > { %p480_p0 = pnand %p479_p13, %p473_p10 }
  0x14   : > { %483 = shalt.err (!%p480_p0)
}
  0x15   : > { %s513_s22 = smov 64   ;;  %s514_s23 = smov 4  }
  0x16   : > { %422 = dma.hbm_to_vmem [thread:$0]  (!%p420_p6), %s604_s1, 128, %s142_s20, [#allocation3], %s513_s22, %s513_s22, %s514_s23  }
  0x17   : > { %171 = sbr.rel (%p559_p3) target bundleno = 238 (0xee), region = 32 }
  0x1c   : > { %497 = dma.done.wait (%p563_p4), [#allocation3], 128  }
  0x1d   : > { %499 = vsyncadd (%p563_p4), [#allocation3], 4294967168  ;;  %p201_p1 = scmp.lt.s32.totalorder %s502_s12, 1  ;;  %v515_v0 = vmov 0.0   ;;  %vm516_vm0 = vmmov 0   ;;  %v517_v1 = vmov 0  }
  0x1e   : > { %409 = vmatprep.subr.bf16.mxu0 %v515_v0  ;;  %411 = vmatprep.mubr.msk.bf16.mxu0 %vm516_vm0, %v515_v0  ;;  %v457_v3 = vld [vmem:[#allocation2] sm:$0x1f]   ;;  %vm245_vm1 = vcmask 130048   ;;  %v223_v5 = vld [vmem:[%s605_s2 + $0x8] sm:$0x3]  ;;  %vm291_vm2 = vcmask 123904  }
  0x1f   : > { %s614_s12 = smov (!%p201_p1, %s502_s12), 1  ;;  %455 = vset.pattern.permute.xlu0 %v517_v1  ;;  %v222_v4 = vld [vmem:[%s605_s2] sm:$0xff] }
  0x20   : > { %s405_s26 = sshll.u32 %s614_s12, 3  ;;  %226 = vperm.xlu0 %455, %v222_v4   ;;  %s406_s7 = sshll.u32 %s614_s12, 4 }
  0x21   : > { %s208_s29 = scalar_lea.vmem %s603_s0, %s405_s26  ;;  %s216_s10 = scalar_lea.vmem %s606_s3, %s406_s7 }
  0x22   : > { %v456_v2 = vld [vmem:[%s208_s29] sm:$0xff]  }
  0x23   : > { %410 = vmatpush3.bf16.msra.mxu0 %v456_v2 }
  0x24   : > { %231 = vperm.xlu0 %455, %v223_v5  }
  0x26   : > { %412 = vmatmul.mubr.msk.bf16.vlgmr.msra.gmra.mxu0 %vm245_vm1, %v457_v3 }
  0x9b   : > { %v227_v6 = vpop.permute.xlu0 %226 }
  0x9f   : > { %v232_v10 = vpop.permute.xlu0 %231 }
  0xe6   : > { %v283_v7 = vpop.f32.mrf.mxu0 }
  0xe7   : > { %v284_v8 = vadd.f32 %v283_v7, %v227_v6 }
  0xe8   : > { %v413_v9 = vpop.f32.mrf.mxu0 }
  0xe9   : > { %290 = vst.msk [vmem:[%s216_s10] sm:$0xff] %vm245_vm1, %v284_v8 }
  0xea   : > { %v286_v11 = vpop.f32.mrf.mxu0 }
  0xeb   : > { %v287_v12 = vadd.f32 %v286_v11, %v232_v10 }
  0xec   : > { %v414_v13 = vpop.f32.mrf.mxu0 }
  0xed   : > { %292 = vst.msk [vmem:[%s216_s10 + $0x8] sm:$0x3] %vm291_vm2, %v287_v12 }
  0xee PF: > { %s14_s14 = sadd.s32 1, %s510_s14   ;;  %s609_s12 = smov %s506_s13 }
  0xef   : > { %p11_p2 = scmp.ge.s32.totalorder %s14_s14, 4   ;;  %s610_s13 = smov %s612_s16 }
  0xf1   :  { %13 = sbr.rel (!%p11_p2) target bundleno = 2 (0x2), region = 67 }
  0xf6   :  { %320 = vsyncpa [#allocation3], 1 }
  0xf7   :  { %322 = vsyncpa [#allocation3 + $0x1], 1 }

</bundles_post_ra>
